<compile_context>
chip_gen: v6e
topology: v6e:2x2x1
jax: 0.10.0
libtpu: 0.0.40
codegen_flags: <defaults>
</compile_context>

<pallas_src>
import jax
import jax.numpy as jnp
from jax import lax
from jax.experimental import pallas as pl
from jax.experimental.pallas import tpu as pltpu


def _round_up(x, m):
    return ((x + m - 1) // m) * m


def _cdiv(a, b):
    return (a + b - 1) // b


def _convtranspose_kernel(x_ref, w_ref, b_ref, o_ref):
    # x_ref: (TM, C1) bf16    w_ref: (C1, Lout) bf16 (BN scale pre-folded)
    # b_ref: (1, Lout) f32    o_ref: (TM, Lout) bf16
    acc = jnp.dot(x_ref[...], w_ref[...], preferred_element_type=jnp.float32)
    y = acc + b_ref[...]                                        # folded BN bias
    o_ref[...] = (y * jax.nn.sigmoid(y)).astype(o_ref.dtype)    # SiLU


def conv_transpose_silu_nhwc(x_nhwc, w_pt, gamma, beta, rmean, rvar,
                             *, k=2, s=2, p=0, eps=1e-5,
                             compute_dtype=jnp.bfloat16,
                             out_dtype=jnp.bfloat16,
                             tile_m=1024):
    """NHWC-native ConvTranspose2d(k, s, p, bias=False) + BatchNorm2d(eval) + SiLU.

    x_nhwc: (N, H, W, C1)
    w_pt:   (C1, C2, k, k)  (PyTorch ConvTranspose2d weight layout)
    returns (N, s*H, s*W, C2) in out_dtype
    """
    assert k == s and p == 0, "kernel implements the module defaults (k == s, p == 0)"
    # TODO(synk): overlapping-tap case (s < k) or p > 0 needs a scatter-add
    # decomposition over taps; not implemented here.

    N, H, W, C1 = x_nhwc.shape
    c1w, C2, kh, kw = w_pt.shape
    assert (c1w, kh, kw) == (C1, k, k)

    LANE = 128
    Lraw = k * k * C2
    Lout = _round_up(Lraw, LANE)          # lane-dense output width (unmasked vst)

    # ---- fold BN scale into the weight (f32), all k*k taps into one (C1, Lout) ----
    inv = (gamma / jnp.sqrt(rvar + eps)).astype(jnp.float32)            # (C2,)
    w_fold = jnp.transpose(w_pt, (0, 2, 3, 1)).astype(jnp.float32) * inv  # (C1,k,k,C2)
    w_fold = w_fold.reshape(C1, Lraw)
    w_fold = jnp.pad(w_fold, ((0, 0), (0, Lout - Lraw))).astype(compute_dtype)

    b_c = (beta - rmean * inv).astype(jnp.float32)                      # (C2,)
    b_fold = jnp.pad(jnp.tile(b_c, k * k), (0, Lout - Lraw)).reshape(1, Lout)

    # ---- flatten batch + spatial into the matmul M dimension ----
    M = N * H * W
    GRAN = 256  # bf16 sublane packing (16 rows/vreg) and MXU M granularity
    TM = min(_round_up(tile_m, GRAN), _round_up(M, GRAN))
    if TM > GRAN and _cdiv(M, TM) < 2:
        # keep >= 2 balanced grid steps so v7x's two TensorCores both get work
        TM = max(GRAN, _round_up(_cdiv(M, 2), GRAN))
    num_tiles = _cdiv(M, TM)
    Mpad = num_tiles * TM

    x2d = x_nhwc.reshape(M, C1)
    if Mpad != M:
        x2d = jnp.pad(x2d, ((0, Mpad - M), (0, 0)))
    x2d = x2d.astype(compute_dtype)

    # ---- explicit VMEM budget (v5e default scoped limit is 16 MiB; v7x phys 64 MiB) ----
    itm = jnp.dtype(compute_dtype).itemsize
    ito = jnp.dtype(out_dtype).itemsize
    vmem_need = (2 * TM * C1 * itm        # double-buffered activation tile
                 + 2 * TM * Lout * ito    # double-buffered output tile
                 + C1 * Lout * itm        # resident folded weight (single buffer)
                 + Lout * 4)              # resident BN bias
    vmem_limit = int(min(max(2 * vmem_need + (8 << 20), 32 << 20), 48 << 20))

    out2d = pl.pallas_call(
        _convtranspose_kernel,
        out_shape=jax.ShapeDtypeStruct((Mpad, Lout), out_dtype),
        grid=(num_tiles,),
        in_specs=[
            pl.BlockSpec((TM, C1), lambda m: (m, 0)),              # activations tile
            pl.BlockSpec((C1, Lout), lambda m: (0, 0),
                         pipeline_mode=pl.Buffered(1)),            # resident weight
            pl.BlockSpec((1, Lout), lambda m: (0, 0),
                         pipeline_mode=pl.Buffered(1)),            # resident BN bias
        ],
        out_specs=pl.BlockSpec((TM, Lout), lambda m: (m, 0)),
        compiler_params=pltpu.CompilerParams(
            dimension_semantics=("parallel",),                     # megacore-shardable
            vmem_limit_bytes=vmem_limit),
    )(x2d, w_fold, b_fold)

    # ---- layout plumbing: un-pad + pixel-shuffle (bf16 -> half the bytes of f32) ----
    # TODO(synk): fuse this pixel-shuffle into the kernel (grid over (N, H-tiles),
    # rearrange in VMEM, write an (N, kH, kW, C2) output BlockSpec) to remove this
    # remaining XLA reshape/transpose HBM pass.
    out = out2d[:M, :Lraw].reshape(N, H, W, k, k, C2)       # (n, i, j, di, dj, co)
    out = out.transpose(0, 1, 3, 2, 4, 5).reshape(N, k * H, k * W, C2)
    return out


def conv_transpose_silu(x_nchw, w_pt, gamma, beta, rmean, rvar, **kw):
    """PyTorch-layout (NCHW) wrapper.  Prefer conv_transpose_silu_nhwc inside an
    NHWC model graph - the two transposes below are pure layout plumbing."""
    x_nhwc = jnp.transpose(x_nchw, (0, 2, 3, 1))
    y = conv_transpose_silu_nhwc(x_nhwc, w_pt, gamma, beta, rmean, rvar, **kw)
    return jnp.transpose(y, (0, 3, 1, 2))                    # (N, C2, sH, sW)


def reference(x, w_pt, gamma, beta, rmean, rvar, k=2, s=2, p=0, eps=1e-5):
    """Pure-JAX (XLA) f32 reference mirroring the PyTorch forward, NCHW."""
    w_oihw = jnp.transpose(jnp.flip(w_pt, axis=(2, 3)), (1, 0, 2, 3))  # (C2,C1,k,k)
    y = lax.conv_general_dilated(
        x, w_oihw, window_strides=(1, 1),
        padding=[(k - 1 - p, k - 1 - p)] * 2,
        lhs_dilation=(s, s),
        dimension_numbers=("NCHW", "OIHW", "NCHW"))
    inv = gamma / jnp.sqrt(rvar + eps)
    y = y * inv.reshape(1, -1, 1, 1) + (beta - rmean * inv).reshape(1, -1, 1, 1)
    return y * jax.nn.sigmoid(y)                              # SiLU


if __name__ == "__main__":
    N, C1, C2, H, W, K, S, P = 2, 4, 8, 16, 16, 2, 2, 0
    key = jax.random.PRNGKey(0)
    ks = jax.random.split(key, 6)

    x = jax.random.normal(ks[0], (N, C1, H, W), jnp.float32)
    # ConvTranspose2d weight: (in_channels, out_channels, kH, kW), no bias (bn=True)
    w_pt = 0.1 * jax.random.normal(ks[1], (C1, C2, K, K), jnp.float32)
    gamma = 1.0 + 0.1 * jax.random.normal(ks[2], (C2,), jnp.float32)          # BN weight
    beta = 0.1 * jax.random.normal(ks[3], (C2,), jnp.float32)                 # BN bias
    rmean = 0.1 * jax.random.normal(ks[4], (C2,), jnp.float32)                # running mean
    rvar = 1.0 + 0.1 * jnp.abs(jax.random.normal(ks[5], (C2,), jnp.float32))  # running var

    out = jax.block_until_ready(
        conv_transpose_silu(x, w_pt, gamma, beta, rmean, rvar, k=K, s=S, p=P))
    ref = reference(x, w_pt, gamma, beta, rmean, rvar, k=K, s=S, p=P)

    assert out.shape == (N, C2, S * H, S * W), out.shape
    out_f32 = out.astype(jnp.float32)
    max_err = jnp.max(jnp.abs(out_f32 - ref))
    # bf16 matmul operands + bf16 output store with f32 accumulation/tail
    assert jnp.allclose(out_f32, ref, atol=2e-2, rtol=2e-2), f"max err {max_err}"
    print("KERNEL_OK")
</pallas_src>

<mosaic_0001>
module attributes {stable_mosaic.version = 11 : i64} {
  func.func @_convtranspose_kernel(%arg0: i32, %arg1: memref<256x4xbf16, #tpu.memory_space<vmem>>, %arg2: memref<4x128xbf16, #tpu.memory_space<vmem>>, %arg3: memref<1x128xf32, #tpu.memory_space<vmem>>, %arg4: memref<256x128xbf16, #tpu.memory_space<vmem>>) attributes {dimension_semantics = [#tpu.dimension_semantics<parallel>], iteration_bounds = array<i64: 2>, scalar_prefetch = 0 : i64, scratch_operands = 0 : i64, tpu.core_type = #tpu.core_type<tc>, window_params = [{transform_indices = @transform_0, window_bounds = array<i64: 256, 4>}, {pipeline_mode = #tpu.pipeline_mode<synchronous>, transform_indices = @transform_1, window_bounds = array<i64: 4, 128>}, {pipeline_mode = #tpu.pipeline_mode<synchronous>, transform_indices = @transform_2, window_bounds = array<i64: 1, 128>}, {transform_indices = @transform_3, window_bounds = array<i64: 256, 128>}]} {
    %c0 = arith.constant 0 : index
    %c0_0 = arith.constant 0 : index
    %0 = vector.load %arg1[%c0, %c0_0] : memref<256x4xbf16, #tpu.memory_space<vmem>>, vector<256x4xbf16>
    %c0_1 = arith.constant 0 : index
    %c0_2 = arith.constant 0 : index
    %1 = vector.load %arg2[%c0_1, %c0_2] : memref<4x128xbf16, #tpu.memory_space<vmem>>, vector<4x128xbf16>
    %cst = arith.constant dense<0.000000e+00> : vector<256x128xf32>
    %2 = tpu.matmul %0, %1, %cst {dimension_numbers = #tpu.dot_dimension_numbers<[1], [0], [0], [1], [0, 0, 1, 1], [], []>} : vector<256x4xbf16>, vector<4x128xbf16>, vector<256x128xf32> -> vector<256x128xf32>
    %c0_3 = arith.constant 0 : index
    %c0_4 = arith.constant 0 : index
    %3 = vector.load %arg3[%c0_3, %c0_4] : memref<1x128xf32, #tpu.memory_space<vmem>>, vector<1x128xf32>
    %4 = vector.broadcast %3 : vector<1x128xf32> to vector<256x128xf32>
    %5 = arith.addf %2, %4 : vector<256x128xf32>
    %6 = arith.negf %5 : vector<256x128xf32>
    %7 = math.exp %6 : vector<256x128xf32>
    %cst_5 = arith.constant 1.000000e+00 : f32
    %8 = vector.broadcast %cst_5 : f32 to vector<256x128xf32>
    %9 = arith.addf %8, %7 : vector<256x128xf32>
    %10 = arith.divf %8, %9 : vector<256x128xf32>
    %11 = arith.mulf %5, %10 : vector<256x128xf32>
    %12 = arith.truncf %11 : vector<256x128xf32> to vector<256x128xbf16>
    %c0_6 = arith.constant 0 : index
    %c0_7 = arith.constant 0 : index
    %13 = vector.load %arg4[%c0_6, %c0_7] : memref<256x128xbf16, #tpu.memory_space<vmem>>, vector<256x128xbf16>
    tpu.vector_store %arg4[%c0_6, %c0_7], %12 {strides = array<i32>} : memref<256x128xbf16, #tpu.memory_space<vmem>>, vector<256x128xbf16>,
    return
  }
  func.func @transform_0(%arg0: i32) -> (i32, i32) {
    %c0_i32 = arith.constant 0 : i32
    %c0_i32_0 = arith.constant 0 : i32
    return %arg0, %c0_i32 : i32, i32
  }
  func.func @transform_1(%arg0: i32) -> (i32, i32) {
    %c0_i32 = arith.constant 0 : i32
    %c0_i32_0 = arith.constant 0 : i32
    %c0_i32_1 = arith.constant 0 : i32
    return %c0_i32, %c0_i32_0 : i32, i32
  }
  func.func @transform_2(%arg0: i32) -> (i32, i32) {
    %c0_i32 = arith.constant 0 : i32
    %c0_i32_0 = arith.constant 0 : i32
    %c0_i32_1 = arith.constant 0 : i32
    return %c0_i32, %c0_i32_0 : i32, i32
  }
  func.func @transform_3(%arg0: i32) -> (i32, i32) {
    %c0_i32 = arith.constant 0 : i32
    %c0_i32_0 = arith.constant 0 : i32
    return %arg0, %c0_i32 : i32, i32
  }
}

</mosaic_0001>

<bundles_post_ra>
// kernel: tpu_custom_call.1
= control target key start
LH: loop header
LB: loop body
LE: loop exit
PB: predicated region body
PF: predicated region fallthrough
CT: control target
= control target key end

     0   :  { %8 = vsyncpa [#allocation3], 0  ;;  %s1858_s0 = inlined_call_operand.vmem [shape: bf16[512,4], index: 0, kind: input, shape index: {}]   ;;  %s1859_s1 = inlined_call_operand.vmem [shape: bf16[4,128], index: 1, kind: input, shape index: {}]   ;;  %s1860_s2 = inlined_call_operand.vmem [shape: f32[1,128], index: 2, kind: input, shape index: {}]   ;;  %s1861_s3 = inlined_call_operand.hbm [shape: bf16[512,128], index: 3, kind: output, shape index: {}]  }
   0x1   :  { %10 = vsyncpa [#allocation3 + $0x1], 0  ;;  %s1529_s12 = smov 0   ;;  %s1531_s13 = smov 0  }
   0x2   :  { %s1533_s14 = smov 0   ;;  %s1535_s15 = smov 0  }
   0x3 LB: > { %s1550_s16 = sadd.s32 4294967295, %s1504_s15   ;;  %s967_s17 = sadd.s32 4294967294, %s1504_s15   ;;  %s1504_s15 = sphi %s1535_s15, %s1867_s15   ;;  %s1500_s14 = sphi %s1533_s14, %s1866_s14   ;;  %s1496_s13 = sphi %s1531_s13, %s1865_s13   ;;  %s1492_s12 = sphi %s1529_s12, %s1864_s12  }
   0x4   : > { %s1554_s18 = sadd.s32 1, %s1504_s15   ;;  %s91_s19 = sadd.s32 1, %s1500_s14 }
   0x5   : > { %s88_s20 = ssub.s32 %s1504_s15, %s1554_s18  ;;  %p101_p0 = scmp.ne.s32.totalorder %s1500_s14, %s1496_s13 }
   0x6   : > { %p89_p1 = scmp.eq.s32.totalorder %s88_s20, 0  ;;  %p102_p2 = scmp.eq.s32.totalorder %s1550_s16, 1 }
   0x7   : > { %p107_p3 = scmp.ne.s32.totalorder %s1496_s13, %s1492_s12  ;;  %p108_p4 = scmp.eq.s32.totalorder %s967_s17, 1 }
   0x8   : > { %s1565_s21 = scalar_select %p89_p1, %s1500_s14, %s91_s19  }
   0x9   : > { %p1567_p5 = por %p102_p2, %p101_p0  ;;  %p1571_p6 = por %p108_p4, %p107_p3 }
   0xa   : > { %p970_p7 = scmp.ge.s32.totalorder %s1504_s15, 1  ;;  %p141_p8 = scmp.lt.s32.totalorder %s1504_s15, 3 }
   0xc   : > { %p142_p9 = pnand %p970_p7, %p141_p8 }
   0xd   : > { %s972_s26 = sshll.u32 (!%p142_p9), %s1550_s16, 5  ;;  %s162_s6 = sand.u32 (!%p142_p9), 1, %s1496_s13  }
   0xe   : > { %145 = sbr.rel (%p142_p9) target bundleno = 316 (0x13c), region = 32  ;;  %p166_p10 = scmp.lt.s32.totalorder (!%p142_p9), %s972_s26, 63 }
   0xf   : > { %s1722_s7 = sshll.u32 (!%p142_p9), %s162_s6, 7  ;;  %s1108_s9 = sshll.u32 (!%p142_p9), %s1550_s16, 11 }
  0x10   : > { %s1753_s8 = scalar_lea.vmem (!%p142_p9), [#allocation2], %s1722_s7  ;;  %s1809_s16 = scalar_lea.hbm (!%p142_p9), %s1861_s3, %s1108_s9 }
  0x11   : > { %s905_s10 = sshll.u32 (!%p142_p9), %s1753_s8, 4  ;;  %s1818_s19 = scalar_lea.sflag (!%p142_p9), [#allocation3], %s162_s6  ;;  %s1811_s10 = int_to_ptr.vmem [resolvable:$true] %s905_s10 }
  0x12   : > { %s1444_s20 = scalar_lea.vmem (!%p142_p9), %s1811_s10, 2048  ;;  %s1506_s24 = smov (!%p142_p9), [#allocation2]  }
  0x13   : > { %v205_v0 = vld [vmem:[%s1859_s1] sm:$0x3]  ;;  %vm342_vm0 = vcmask 1041408   ;;  %s1869_s26 = smov (!%p166_p10, %s972_s26), 63  ;;  %vm293_vm1 = vcmask 31744   ;;  %p1445_p11 = scmp.ne.s32.totalorder %s1811_s10, %s1444_s20 }
  0x14   : > { %1257 = vmatprep.subr.msk.bf16.mxu0 %vm342_vm0, %v205_v0  ;;  %1258 = vmatprep.subr.msk.bf16.mxu1 %vm342_vm0, %v205_v0  ;;  %v344_v1 = vsel %vm342_vm0, %v205_v0, 0  ;;  %s973_s27 = sshll.u32 %s1869_s26, 2  ;;  %v1621_v18 = vld [vmem:[%s1860_s2] ss:$0 sm:$0xff]  ;;  %s1448_s25 = sshll.u32 %s1506_s24, 4  ;;  %s1449_s25 = int_to_ptr.vmem [resolvable:$false] %s1448_s25 }
  0x15   : > { %1222 = vmatpush3.bf16.msra.mxu0 %v344_v1  ;;  %1256 = vmatpush3.bf16.msra.mxu1 %v344_v1  ;;  %s1584_s30 = scalar_lea.vmem %s1858_s0, %s973_s27  ;;  %p1446_p12 = pnand %p1445_p11, %p1567_p5 }
  0x16   : > { %v1300_v2 = vld [vmem:[%s1584_s30] sm:$0xff]   ;;  %v1302_v4 = vld [vmem:[%s1584_s30 + $0x8] sm:$0xff]   ;;  %v1304_v6 = vld [vmem:[%s1584_s30 + $0x10] sm:$0xff]   ;;  %s1450_s26 = scalar_lea.vmem %s1449_s25, 4096  ;;  %p1451_p0 = scmp.lt.s32.totalorder %s1811_s10, %s1449_s25 }
  0x17   : > { %v1301_v3 = vld [vmem:[%s1584_s30 + $0x40] sm:$0xff]   ;;  %1223 = vmatprep.mubr.msk.bf16.mxu0 %vm293_vm1, %v1300_v2  ;;  %v1303_v5 = vld [vmem:[%s1584_s30 + $0x48] sm:$0xff]   ;;  %v1305_v7 = vld [vmem:[%s1584_s30 + $0x50] sm:$0xff]   ;;  %p1447_p13 = pneg %p1446_p12  ;;  %p1452_p1 = scmp.lt.s32.totalorder %s1450_s26, %s1444_s20 }
  0x18   : > { %1239 = vmatprep.mubr.msk.bf16.mxu1 %vm293_vm1, %v1301_v3  ;;  %1224 = vmatmul.mubr.msk.bf16.vlgmr.msra.gmra.mxu0 %vm293_vm1, %v1302_v4  ;;  %v1306_v8 = vld [vmem:[%s1584_s30 + $0x18] sm:$0xff]   ;;  %v1308_v10 = vld [vmem:[%s1584_s30 + $0x20] sm:$0xff]   ;;  %v1310_v12 = vld [vmem:[%s1584_s30 + $0x28] sm:$0xff]  }
  0x19   : > { %1240 = vmatmul.mubr.msk.bf16.vlgmr.msra.gmra.mxu1 %vm293_vm1, %v1303_v5  ;;  %1227 = vmatprep.mubr.msk.bf16.mxu0 %vm293_vm1, %v1304_v6  ;;  %v1307_v9 = vld [vmem:[%s1584_s30 + $0x58] sm:$0xff]   ;;  %v1309_v11 = vld [vmem:[%s1584_s30 + $0x60] sm:$0xff]   ;;  %v1311_v13 = vld [vmem:[%s1584_s30 + $0x68] sm:$0xff]   ;;  %p1453_p2 = por %p1452_p1, %p1451_p0 }
  0x1a   : > { %1243 = vmatprep.mubr.msk.bf16.mxu1 %vm293_vm1, %v1305_v7  ;;  %v1312_v14 = vld [vmem:[%s1584_s30 + $0x30] sm:$0xff]   ;;  %v1314_v16 = vld [vmem:[%s1584_s30 + $0x38] sm:$0xff]  }
  0x1b   : > { %v1313_v15 = vld [vmem:[%s1584_s30 + $0x70] sm:$0xff]   ;;  %v1315_v17 = vld [vmem:[%s1584_s30 + $0x78] sm:$0xff]   ;;  %p1454_p3 = pnand %p1453_p2, %p1447_p13 }
  0x20   : > { %1228 = vmatmul.mubr.msk.bf16.gmra.mxu0 %vm293_vm1, %v1306_v8 }
  0x21   : > { %1244 = vmatmul.mubr.msk.bf16.gmra.mxu1 %vm293_vm1, %v1307_v9  ;;  %1231 = vmatprep.mubr.msk.bf16.mxu0 %vm293_vm1, %v1308_v10 }
  0x22   : > { %1247 = vmatprep.mubr.msk.bf16.mxu1 %vm293_vm1, %v1309_v11 }
  0x28   : > { %1232 = vmatmul.mubr.msk.bf16.gmra.mxu0 %vm293_vm1, %v1310_v12 }
  0x29   : > { %1248 = vmatmul.mubr.msk.bf16.gmra.mxu1 %vm293_vm1, %v1311_v13  ;;  %1235 = vmatprep.mubr.msk.bf16.mxu0 %vm293_vm1, %v1312_v14 }
  0x2a   : > { %1251 = vmatprep.mubr.msk.bf16.mxu1 %vm293_vm1, %v1313_v15 }
  0x30   : > { %1236 = vmatmul.mubr.msk.bf16.gmra.mxu0 %vm293_vm1, %v1314_v16 }
  0x31   : > { %1252 = vmatmul.mubr.msk.bf16.gmra.mxu1 %vm293_vm1, %v1315_v17 }
  0xd8   : > { %v1225_v19 = vpop.f32.mrf.mxu0 }
  0xd9   : > { %v1624_v20 = vadd.f32 %v1225_v19, %v1621_v18  ;;  %v1241_v21 = vpop.f32.mrf.mxu1 }
  0xda   : > { %v1627_v22 = vadd.f32 %v1241_v21, %v1621_v18  ;;  %v380_v23 = vpop.f32.mrf.mxu0 }
  0xdb   : > { %v1009_v24 = vmul.f32 -1.442695, %v1624_v20  ;;  %v1631_v25 = vadd.f32 %v1621_v18, %v380_v23  ;;  %v444_v26 = vpop.f32.mrf.mxu1 }
  0xdc   : > { %v1025_v27 = vmul.f32 -1.442695, %v1627_v22  ;;  %v1635_v28 = vadd.f32 %v1621_v18, %v444_v26  ;;  %v1226_v29 = vpop.f32.mrf.mxu0 }
  0xdd   : > { %1316 = vpow2.f32 %v1009_v24  ;;  %v1007_v30 = vmul.f32 -1.442695, %v1631_v25  ;;  %v1639_v31 = vadd.f32 %v1226_v29, %v1621_v18  ;;  %v1242_v32 = vpop.f32.mrf.mxu1 }
  0xde   : > { %1318 = vpow2.f32 %v1025_v27  ;;  %v1023_v33 = vmul.f32 -1.442695, %v1635_v28  ;;  %v1643_v34 = vadd.f32 %v1242_v32, %v1621_v18  ;;  %v383_v35 = vpop.f32.mrf.mxu0 }
  0xdf   : > { %1320 = vpow2.f32 %v1007_v30  ;;  %v1010_v36 = vmul.f32 -1.442695, %v1639_v31  ;;  %v1647_v37 = vadd.f32 %v1621_v18, %v383_v35  ;;  %v447_v38 = vpop.f32.mrf.mxu1 }
  0xe0   : > { %1322 = vpow2.f32 %v1023_v33  ;;  %v1026_v39 = vmul.f32 -1.442695, %v1643_v34  ;;  %v1651_v40 = vadd.f32 %v1621_v18, %v447_v38  ;;  %v1229_v41 = vpop.f32.mrf.mxu0 }
  0xe1   : > { %1324 = vpow2.f32 %v1010_v36  ;;  %v1008_v42 = vmul.f32 -1.442695, %v1647_v37  ;;  %v1655_v43 = vadd.f32 %v1229_v41, %v1621_v18  ;;  %v1245_v44 = vpop.f32.mrf.mxu1 }
  0xe2   : > { %1326 = vpow2.f32 %v1026_v39  ;;  %v1024_v45 = vmul.f32 -1.442695, %v1651_v40  ;;  %v1659_v46 = vadd.f32 %v1245_v44, %v1621_v18  ;;  %v396_v47 = vpop.f32.mrf.mxu0 }
  0xe3   : > { %1328 = vpow2.f32 %v1008_v42  ;;  %v1013_v48 = vmul.f32 -1.442695, %v1655_v43  ;;  %v1663_v49 = vadd.f32 %v1621_v18, %v396_v47  ;;  %v460_v50 = vpop.f32.mrf.mxu1 }
  0xe4   : > { %1330 = vpow2.f32 %v1024_v45  ;;  %v1029_v51 = vmul.f32 -1.442695, %v1659_v46  ;;  %v1667_v52 = vadd.f32 %v1621_v18, %v460_v50  ;;  %v1230_v53 = vpop.f32.mrf.mxu0 }
  0xe5   : > { %1332 = vpow2.f32 %v1013_v48  ;;  %v1011_v54 = vmul.f32 -1.442695, %v1663_v49  ;;  %v1671_v55 = vadd.f32 %v1230_v53, %v1621_v18  ;;  %v1246_v56 = vpop.f32.mrf.mxu1 }
  0xe6   : > { %1334 = vpow2.f32 %v1029_v51  ;;  %v1027_v57 = vmul.f32 -1.442695, %v1667_v52  ;;  %v1675_v58 = vadd.f32 %v1246_v56, %v1621_v18  ;;  %v399_v59 = vpop.f32.mrf.mxu0 }
  0xe7   : > { %1336 = vpow2.f32 %v1011_v54  ;;  %v1014_v60 = vmul.f32 -1.442695, %v1671_v55  ;;  %v1679_v61 = vadd.f32 %v1621_v18, %v399_v59  ;;  %v463_v62 = vpop.f32.mrf.mxu1 }
  0xe8   : > { %1338 = vpow2.f32 %v1027_v57  ;;  %v1030_v63 = vmul.f32 -1.442695, %v1675_v58  ;;  %v1683_v0 = vadd.f32 %v1621_v18, %v463_v62  ;;  %v1233_v1 = vpop.f32.mrf.mxu0 }
  0xe9   : > { %1340 = vpow2.f32 %v1014_v60  ;;  %v1012_v2 = vmul.f32 -1.442695, %v1679_v61  ;;  %v1249_v3 = vpop.f32.mrf.mxu1  ;;  %v1688_v35 = vadd.f32 %v1233_v1, %v1621_v18 }
  0xea   : > { %v1317_v4 = vpop.eup %1316  ;;  %1342 = vpow2.f32 %v1030_v63  ;;  %v1028_v5 = vmul.f32 -1.442695, %v1683_v0  ;;  %v412_v6 = vpop.f32.mrf.mxu0  ;;  %v1691_v47 = vadd.f32 %v1249_v3, %v1621_v18 }
  0xeb   : > { %v1319_v7 = vpop.eup %1318  ;;  %v605_v8 = vadd.f32 1.0, %v1317_v4  ;;  %1344 = vpow2.f32 %v1012_v2  ;;  %v476_v9 = vpop.f32.mrf.mxu1  ;;  %v1017_v53 = vmul.f32 -1.442695, %v1688_v35  ;;  %v1695_v54 = vadd.f32 %v1621_v18, %v412_v6 }
  0xec   : > { %v1321_v10 = vpop.eup %1320  ;;  %v621_v11 = vadd.f32 1.0, %v1319_v7  ;;  %1346 = vpow2.f32 %v1028_v5  ;;  %v1234_v12 = vpop.f32.mrf.mxu0  ;;  %v1698_v59 = vadd.f32 %v1621_v18, %v476_v9 }
  0xed   : > { %v1323_v13 = vpop.eup %1322  ;;  %1348 = vrcp.f32 %v605_v8  ;;  %v603_v14 = vadd.f32 1.0, %v1321_v10  ;;  %v1250_v15 = vpop.f32.mrf.mxu1  ;;  %v1701_v60 = vadd.f32 %v1234_v12, %v1621_v18 }
  0xee   : > { %v1325_v16 = vpop.eup %1324  ;;  %1350 = vrcp.f32 %v621_v11  ;;  %v619_v17 = vadd.f32 1.0, %v1323_v13  ;;  %v415_v26 = vpop.f32.mrf.mxu0  ;;  %v1705_v1 = vadd.f32 %v1250_v15, %v1621_v18  ;;  %v1033_v11 = vmul.f32 -1.442695, %v1691_v47 }
  0xef   : > { %v1327_v19 = vpop.eup %1326  ;;  %1352 = vrcp.f32 %v603_v14  ;;  %v606_v21 = vadd.f32 1.0, %v1325_v16  ;;  %v479_v30 = vpop.f32.mrf.mxu1  ;;  %v1708_v2 = vadd.f32 %v1621_v18, %v415_v26  ;;  %v1015_v14 = vmul.f32 -1.442695, %v1695_v54 }
  0xf0   : > { %v1329_v23 = vpop.eup %1328  ;;  %1354 = vrcp.f32 %v619_v17  ;;  %v622_v24 = vadd.f32 1.0, %v1327_v19  ;;  %v1237_v42 = vpop.f32.mrf.mxu0  ;;  %v1711_v6 = vadd.f32 %v1621_v18, %v479_v30  ;;  %v1031_v16 = vmul.f32 -1.442695, %v1698_v59 }
  0xf1   : > { %v1331_v27 = vpop.eup %1330  ;;  %1356 = vrcp.f32 %v606_v21  ;;  %v604_v29 = vadd.f32 1.0, %v1329_v23  ;;  %v1253_v48 = vpop.f32.mrf.mxu1  ;;  %v1714_v7 = vadd.f32 %v1237_v42, %v1621_v18  ;;  %v1018_v17 = vmul.f32 -1.442695, %v1701_v60 }
  0xf2   : > { %v1333_v32 = vpop.eup %1332  ;;  %1358 = vrcp.f32 %v622_v24  ;;  %v620_v33 = vadd.f32 1.0, %v1331_v27  ;;  %v428_v3 = vpop.f32.mrf.mxu0  ;;  %v1718_v12 = vadd.f32 %v1253_v48, %v1621_v18  ;;  %v1034_v19 = vmul.f32 -1.442695, %v1705_v1 }
  0xf3   : > { %v1335_v36 = vpop.eup %1334  ;;  %1360 = vrcp.f32 %v604_v29  ;;  %v609_v38 = vadd.f32 1.0, %v1333_v32  ;;  %v492_v8 = vpop.f32.mrf.mxu1  ;;  %v1016_v24 = vmul.f32 -1.442695, %v1708_v2  ;;  %v1032_v26 = vmul.f32 -1.442695, %v1711_v6 }
  0xf4   : > { %v1337_v39 = vpop.eup %1336  ;;  %1362 = vrcp.f32 %v620_v33  ;;  %v625_v41 = vadd.f32 1.0, %v1335_v36  ;;  %v1238_v21 = vpop.f32.mrf.mxu0  ;;  %v1021_v27 = vmul.f32 -1.442695, %v1714_v7  ;;  %v1037_v32 = vmul.f32 -1.442695, %v1718_v12 }
  0xf5   : > { %v1339_v44 = vpop.eup %1338  ;;  %1364 = vrcp.f32 %v609_v38  ;;  %v607_v45 = vadd.f32 1.0, %v1337_v39  ;;  %v1254_v29 = vpop.f32.mrf.mxu1  ;;  %v1733_v33 = vadd.f32 %v1621_v18, %v428_v3  ;;  %v1736_v36 = vadd.f32 %v1621_v18, %v492_v8 }
  0xf6   : > { %v1341_v50 = vpop.eup %1340  ;;  %1366 = vrcp.f32 %v625_v41  ;;  %v623_v51 = vadd.f32 1.0, %v1339_v44  ;;  %v1741_v42 = vadd.f32 %v1238_v21, %v1621_v18 }
  0xf7   : > { %v1343_v56 = vpop.eup %1342  ;;  %1368 = vrcp.f32 %v607_v45  ;;  %v610_v57 = vadd.f32 1.0, %v1341_v50  ;;  %v1746_v50 = vadd.f32 %v1254_v29, %v1621_v18 }
  0xf8   : > { %v1345_v62 = vpop.eup %1344  ;;  %1370 = vrcp.f32 %v623_v51  ;;  %v626_v63 = vadd.f32 1.0, %v1343_v56  ;;  %v431_v51 = vpop.f32.mrf.mxu0 }
  0xf9   : > { %v1347_v4 = vpop.eup %1346  ;;  %1372 = vrcp.f32 %v610_v57  ;;  %v608_v5 = vadd.f32 1.0, %v1345_v62  ;;  %v495_v57 = vpop.f32.mrf.mxu1 }
  0xfa   : > { %v1349_v9 = vpop.eup %1348  ;;  %1374 = vrcp.f32 %v626_v63  ;;  %v624_v10 = vadd.f32 1.0, %v1347_v4  ;;  %v1758_v4 = vadd.f32 %v1621_v18, %v431_v51  ;;  %v1763_v8 = vadd.f32 %v1621_v18, %v495_v57 }
  0xfb   : > { %v1351_v13 = vpop.eup %1350  ;;  %1376 = vrcp.f32 %v608_v5  ;;  %v701_v39 = vmul.f32 %v1349_v9, %v1624_v20 }
  0xfc   : > { %v1353_v15 = vpop.eup %1352  ;;  %1378 = vrcp.f32 %v624_v10  ;;  %v717_v45 = vmul.f32 %v1351_v13, %v1627_v22  ;;  %v1022_v10 = vmul.f32 -1.442695, %v1741_v42  ;;  %v1038_v13 = vmul.f32 -1.442695, %v1746_v50 }
  0xfd   : > { %v1355_v23 = vpop.eup %1354  ;;  %1380 = vpow2.f32 %v1017_v53  ;;  %v699_v20 = vmul.f32 %v1353_v15, %v1631_v25 }
  0xfe   : > { %v1357_v30 = vpop.eup %1356  ;;  %1382 = vpow2.f32 %v1033_v11  ;;  %v715_v63 = vmul.f32 %v1355_v23, %v1635_v28  ;;  %v1036_v23 = vmul.f32 -1.442695, %v1763_v8 }
  0xff   : > { %v1359_v38 = vpop.eup %1358  ;;  %v702_v41 = vmul.f32 %v1357_v30, %v1639_v31  ;;  %1384 = vpow2.f32 %v1015_v14 }
 0x100   : > { %v1361_v44 = vpop.eup %1360  ;;  %v718_v48 = vmul.f32 %v1359_v38, %v1643_v34  ;;  %1386 = vpow2.f32 %v1031_v16 }
 0x101   : > { %v1363_v53 = vpop.eup %1362  ;;  %v1117_v56 = vpack.c.bf16 %v702_v41, %v701_v39  ;;  %v700_v31 = vmul.f32 %v1361_v44, %v1647_v37  ;;  %1388 = vpow2.f32 %v1018_v17  ;;  %v1019_v37 = vmul.f32 -1.442695, %v1733_v33 }
 0x102   : > { %v1365_v62 = vpop.eup %1364  ;;  %v1157_v22 = vpack.c.bf16 %v718_v48, %v717_v45  ;;  %v716_v34 = vmul.f32 %v1363_v53, %v1651_v40  ;;  %1390 = vpow2.f32 %v1034_v19  ;;  %v1035_v40 = vmul.f32 -1.442695, %v1736_v36 }
 0x103   : > { %v1367_v3 = vpop.eup %1366  ;;  %1189 = vst [vmem:[%s1753_s8 + $0x8] sm:$0xff] %v1117_v56   ;;  %v1112_v25 = vpack.c.bf16 %v700_v31, %v699_v20  ;;  %1392 = vpow2.f32 %v1016_v24  ;;  %v705_v15 = vmul.f32 %v1365_v62, %v1655_v43  ;;  %v1020_v17 = vmul.f32 -1.442695, %v1758_v4 }
 0x104   : > { %v1369_v28 = vpop.eup %1368  ;;  %1197 = vst [vmem:[%s1753_s8 + $0x48] sm:$0xff] %v1157_v22   ;;  %v1152_v5 = vpack.c.bf16 %v716_v34, %v715_v63  ;;  %1394 = vpow2.f32 %v1032_v26  ;;  %v721_v19 = vmul.f32 %v1367_v3, %v1659_v46 }
 0x105   : > { %v1371_v9 = vpop.eup %1370  ;;  %1113 = vst [vmem:[%s1753_s8] sm:$0xff] %v1112_v25   ;;  %1396 = vpow2.f32 %v1021_v27  ;;  %v703_v26 = vmul.f32 %v1369_v28, %v1663_v49 }
 0x106   : > { %v1373_v11 = vpop.eup %1372  ;;  %1196 = vst [vmem:[%s1753_s8 + $0x40] sm:$0xff] %v1152_v5   ;;  %1398 = vpow2.f32 %v1037_v32  ;;  %v719_v29 = vmul.f32 %v1371_v9, %v1667_v52 }
 0x107   : > { %v1375_v14 = vpop.eup %1374  ;;  %v706_v16 = vmul.f32 %v1373_v11, %v1671_v55  ;;  %1400 = vpow2.f32 %v1019_v37 }
 0x108   : > { %v1377_v18 = vpop.eup %1376  ;;  %v722_v21 = vmul.f32 %v1375_v14, %v1675_v58  ;;  %1402 = vpow2.f32 %v1035_v40 }
 0x109   : > { %v1379_v24 = vpop.eup %1378  ;;  %v1127_v27 = vpack.c.bf16 %v706_v16, %v705_v15  ;;  %v704_v43 = vmul.f32 %v1377_v18, %v1679_v61  ;;  %1404 = vpow2.f32 %v1022_v10 }
 0x10a   : > { %v1381_v55 = vpop.eup %1380  ;;  %v1167_v30 = vpack.c.bf16 %v722_v21, %v721_v19  ;;  %v720_v46 = vmul.f32 %v1379_v24, %v1683_v0  ;;  %1406 = vpow2.f32 %v1038_v13 }
 0x10b   : > { %v1383_v58 = vpop.eup %1382  ;;  %1191 = vst [vmem:[%s1753_s8 + $0x18] sm:$0xff] %v1127_v27   ;;  %v1122_v32 = vpack.c.bf16 %v704_v43, %v703_v26  ;;  %v613_v38 = vadd.f32 1.0, %v1381_v55  ;;  %1408 = vpow2.f32 %v1020_v17 }
 0x10c   : > { %v1385_v39 = vpop.eup %1384  ;;  %1199 = vst [vmem:[%s1753_s8 + $0x58] sm:$0xff] %v1167_v30   ;;  %v1162_v49 = vpack.c.bf16 %v720_v46, %v719_v29  ;;  %v629_v41 = vadd.f32 1.0, %v1383_v58  ;;  %1410 = vpow2.f32 %v1036_v23 }
 0x10d   : > { %v1387_v61 = vpop.eup %1386  ;;  %1190 = vst [vmem:[%s1753_s8 + $0x10] sm:$0xff] %v1122_v32   ;;  %1412 = vrcp.f32 %v613_v38  ;;  %v611_v44 = vadd.f32 1.0, %v1385_v39 }
 0x10e   : > { %v1389_v52 = vpop.eup %1388  ;;  %1198 = vst [vmem:[%s1753_s8 + $0x50] sm:$0xff] %v1162_v49   ;;  %1414 = vrcp.f32 %v629_v41  ;;  %v627_v0 = vadd.f32 1.0, %v1387_v61 }
 0x10f   : > { %v1391_v45 = vpop.eup %1390  ;;  %1416 = vrcp.f32 %v611_v44  ;;  %v614_v48 = vadd.f32 1.0, %v1389_v52 }
 0x110   : > { %v1393_v51 = vpop.eup %1392  ;;  %1418 = vrcp.f32 %v627_v0  ;;  %v630_v53 = vadd.f32 1.0, %v1391_v45 }
 0x111   : > { %v1395_v20 = vpop.eup %1394  ;;  %1420 = vrcp.f32 %v614_v48  ;;  %v612_v56 = vadd.f32 1.0, %v1393_v51 }
 0x112   : > { %v1397_v31 = vpop.eup %1396  ;;  %1422 = vrcp.f32 %v630_v53  ;;  %v628_v57 = vadd.f32 1.0, %v1395_v20 }
 0x113   : > { %v1399_v62 = vpop.eup %1398  ;;  %1424 = vrcp.f32 %v612_v56  ;;  %v617_v63 = vadd.f32 1.0, %v1397_v31 }
 0x114   : > { %v1401_v22 = vpop.eup %1400  ;;  %1426 = vrcp.f32 %v628_v57  ;;  %v633_v34 = vadd.f32 1.0, %v1399_v62 }
 0x115   : > { %v1403_v3 = vpop.eup %1402  ;;  %1428 = vrcp.f32 %v617_v63  ;;  %v615_v25 = vadd.f32 1.0, %v1401_v22 }
 0x116   : > { %v1405_v37 = vpop.eup %1404  ;;  %1430 = vrcp.f32 %v633_v34  ;;  %v631_v28 = vadd.f32 1.0, %v1403_v3 }
 0x117   : > { %v1407_v5 = vpop.eup %1406  ;;  %1432 = vrcp.f32 %v615_v25  ;;  %v618_v40 = vadd.f32 1.0, %v1405_v37 }
 0x118   : > { %v1409_v9 = vpop.eup %1408  ;;  %1434 = vrcp.f32 %v631_v28  ;;  %v634_v10 = vadd.f32 1.0, %v1407_v5 }
 0x119   : > { %v1411_v11 = vpop.eup %1410  ;;  %1436 = vrcp.f32 %v618_v40  ;;  %v616_v13 = vadd.f32 1.0, %v1409_v9 }
 0x11a   : > { %v1413_v14 = vpop.eup %1412  ;;  %1438 = vrcp.f32 %v634_v10  ;;  %v632_v15 = vadd.f32 1.0, %v1411_v11 }
 0x11b   : > { %v1415_v16 = vpop.eup %1414  ;;  %1440 = vrcp.f32 %v616_v13  ;;  %v709_v23 = vmul.f32 %v1413_v14, %v1688_v35 }
 0x11c   : > { %v1417_v17 = vpop.eup %1416  ;;  %1442 = vrcp.f32 %v632_v15  ;;  %v725_v27 = vmul.f32 %v1415_v16, %v1691_v47 }
 0x11d   : > { %v1419_v18 = vpop.eup %1418  ;;  %v707_v29 = vmul.f32 %v1417_v17, %v1695_v54 }
 0x11e   : > { %v1421_v19 = vpop.eup %1420  ;;  %v723_v32 = vmul.f32 %v1419_v18, %v1698_v59 }
 0x11f   : > { %v1423_v21 = vpop.eup %1422  ;;  %v710_v24 = vmul.f32 %v1421_v19, %v1701_v60 }
 0x120   : > { %v1425_v26 = vpop.eup %1424  ;;  %v726_v43 = vmul.f32 %v1423_v21, %v1705_v1 }
 0x121   : > { %v1427_v55 = vpop.eup %1426  ;;  %v1137_v30 = vpack.c.bf16 %v710_v24, %v709_v23  ;;  %v708_v46 = vmul.f32 %v1425_v26, %v1708_v2 }
 0x122   : > { %v1429_v58 = vpop.eup %1428  ;;  %v1177_v35 = vpack.c.bf16 %v726_v43, %v725_v27  ;;  %v724_v60 = vmul.f32 %v1427_v55, %v1711_v6 }
 0x123   : > { %v1431_v38 = vpop.eup %1430  ;;  %1193 = vst [vmem:[%s1753_s8 + $0x28] sm:$0xff] %v1137_v30   ;;  %v1132_v47 = vpack.c.bf16 %v708_v46, %v707_v29  ;;  %v713_v41 = vmul.f32 %v1429_v58, %v1714_v7 }
 0x124   : > { %v1433_v1 = vpop.eup %1432  ;;  %1201 = vst [vmem:[%s1753_s8 + $0x68] sm:$0xff] %v1177_v35   ;;  %v1172_v39 = vpack.c.bf16 %v724_v60, %v723_v32  ;;  %v729_v6 = vmul.f32 %v1431_v38, %v1718_v12 }
 0x125   : > { %v1435_v49 = vpop.eup %1434  ;;  %1192 = vst [vmem:[%s1753_s8 + $0x20] sm:$0xff] %v1132_v47   ;;  %v711_v0 = vmul.f32 %v1433_v1, %v1733_v33 }
 0x126   : > { %v1437_v54 = vpop.eup %1436  ;;  %1200 = vst [vmem:[%s1753_s8 + $0x60] sm:$0xff] %v1172_v39  }
 0x127   : > { %v1439_v2 = vpop.eup %1438  ;;  %v714_v59 = vmul.f32 %v1437_v54, %v1741_v42  ;;  %v727_v42 = vmul.f32 %v1435_v49, %v1736_v36 }
 0x128   : > { %v1441_v61 = vpop.eup %1440  ;;  %v730_v44 = vmul.f32 %v1439_v2, %v1746_v50 }
 0x129   : > { %v1443_v52 = vpop.eup %1442  ;;  %v1147_v45 = vpack.c.bf16 %v714_v59, %v713_v41  ;;  %v712_v7 = vmul.f32 %v1441_v61, %v1758_v4 }
 0x12a   : > { %v1187_v48 = vpack.c.bf16 %v730_v44, %v729_v6  ;;  %v728_v51 = vmul.f32 %v1443_v52, %v1763_v8 }
 0x12b   : > { %1195 = vst [vmem:[%s1753_s8 + $0x38] sm:$0xff] %v1147_v45   ;;  %v1142_v12 = vpack.c.bf16 %v712_v7, %v711_v0 }
 0x12c   : > { %1203 = vst [vmem:[%s1753_s8 + $0x78] sm:$0xff] %v1187_v48   ;;  %v1182_v33 = vpack.c.bf16 %v728_v51, %v727_v42 }
 0x12d   : > { %1194 = vst [vmem:[%s1753_s8 + $0x30] sm:$0xff] %v1142_v12  }
 0x12e   : > { %1202 = vst [vmem:[%s1753_s8 + $0x70] sm:$0xff] %v1182_v33  }
 0x12f   : > { %1457 = shalt.err (!%p1454_p3)
}
 0x130   : > { %s1458_s27 = scalar_lea.hbm %s1809_s16, 2048  ;;  %s1462_s30 = scalar_lea.hbm %s1861_s3, 4096 }
 0x131   : > { %p1459_p4 = scmp.ne.s32.totalorder %s1809_s16, %s1458_s27  ;;  %p1463_p9 = scmp.lt.s32.totalorder %s1809_s16, %s1861_s3 }
 0x132   : > { %p1464_p10 = scmp.lt.s32.totalorder %s1462_s30, %s1458_s27 }
 0x133   : > { %p1460_p7 = pnand %p1459_p4, %p1567_p5 }
 0x134   : > { %p1465_p11 = por %p1464_p10, %p1463_p9 }
 0x135   : > { %p1461_p8 = pneg %p1460_p7 }
 0x137   : > { %p1466_p12 = pnand %p1465_p11, %p1461_p8 }
 0x139   : > { %1469 = shalt.err (!%p1466_p12)
}
 0x13a   : > { %s1507_s6 = smov 64   ;;  %s1508_s7 = smov 4  }
 0x13b   : > { %1259 = dma.vmem_to_hbm [thread:$0]  (%p1567_p5), %s1811_s10, 2048, %s1809_s16, %s1818_s19, %s1507_s6, %s1507_s6, %s1508_s7  }
 0x13c PF: > { %p1265_p13 = scmp.ge.s32.totalorder %s1504_s15, 2  ;;  %s920_s8 = sand.u32 1, %s1492_s12  }
 0x13d   : > { %s921_s9 = scalar_lea.sflag [#allocation3], %s920_s8 }
 0x13e   : > { %p1262_p0 = pnand %p1265_p13, %p1571_p6 }
 0x140   : > { %p1263_p1 = pneg %p1262_p0 }
 0x142   : > { %1487 = dma.done.wait (%p1263_p1), %s921_s9, 2048  }
 0x143   : > { %1489 = vsyncadd (%p1263_p1), %s921_s9, 4294965248  ;;  %p13_p2 = scmp.ge.s32.totalorder %s1554_s18, 4   ;;  %s1864_s12 = smov %s1496_s13 }
 0x144   : > { %s1865_s13 = smov %s1500_s14  ;;  %s1866_s14 = smov %s1565_s21 }
 0x145   : > { %s1867_s15 = smov %s1554_s18  ;;  %15 = sbr.rel (!%p13_p2) target bundleno = 3 (0x3), region = 67 }
 0x14a   :  { %926 = vsyncpa [#allocation3], 1 }
 0x14b   :  { %928 = vsyncpa [#allocation3 + $0x1], 1 }

</bundles_post_ra>
